<compile_context>
chip_gen: v5e
topology: v5e:2x2
jax: 0.10.0
libtpu: 0.0.40
codegen_flags: <defaults>
</compile_context>

<pallas_src>
import functools
import math

import jax
import jax.numpy as jnp
import numpy as np
from jax.experimental import pallas as pl
from jax.experimental.pallas import tpu as pltpu


def _mha_kernel(q_ref, k_ref, bias_ref, wq_ref, bq_ref, wk_ref, bk_ref, o_ref,
                *, d_k):
    bt, s, d = q_ref.shape                 # (block_b, S, D)
    ht = wq_ref.shape[1] // d_k            # heads handled this grid step

    # ---- fused lane-full projections (1/sqrt(d_k) already folded into wq/bq) -----
    # One (block_b*S, D) @ (D, block_h*d_k) matmul each; bf16 operands, f32 accum.
    q2 = q_ref[...].reshape(bt * s, d)     # leading-dim merge only (no relayout)
    k2 = k_ref[...].reshape(bt * s, d)
    qp = jnp.dot(q2, wq_ref[...], preferred_element_type=jnp.float32) + bq_ref[...]
    kp = jnp.dot(k2, wk_ref[...], preferred_element_type=jnp.float32) + bk_ref[...]
    qp = qp.astype(jnp.bfloat16)           # bf16 operands for the scores MXU pass
    kp = kp.astype(jnp.bfloat16)

    # Additive mask bias, precomputed host-side as (mask - 1) * 1e9.  Broadcast over
    # query rows is hoisted out of the head loop (JAX does not CSE broadcast_in_dim).
    # NOTE: exact match to masked_fill only for {0,1} masks with >= 1 valid key/row.
    bias = jnp.broadcast_to(bias_ref[...], (bt, s, s))      # (block_b, S_q, S_k)

    # ---- per-head scores + softmax ------------------------------------------------
    # Head h occupies lane columns [h*d_k, (h+1)*d_k) of the fused projection; a
    # static lane slice + leading-dim reshape gives (block_b, S, d_k) without any
    # transpose.  Batching heads into one einsum would not improve MXU utilization
    # (batch entries are pushed sequentially), so heads unroll here and each head's
    # probabilities are stored lane-dense straight into its output slice.
    for h in range(ht):
        cols = slice(h * d_k, (h + 1) * d_k)
        qh = qp[:, cols].reshape(bt, s, d_k)
        kh = kp[:, cols].reshape(bt, s, d_k)
        # TODO(synk): confirm in the bundle dump that this einsum does not emit a
        # per-step vxpose of kh; if it does, produce kh in (d_k, S) layout instead.
        scores = jnp.einsum('bqd,bkd->bqk', qh, kh,
                            preferred_element_type=jnp.float32) + bias
        scores = scores - jnp.max(scores, axis=-1, keepdims=True)
        e = jnp.exp(scores)
        p = e * pl.reciprocal(jnp.sum(e, axis=-1, keepdims=True), approx=True)
        o_ref[:, h, :, :] = p              # lane-dense store (last dim = S)
    # TODO(synk): dropout on p_attn is identity in eval mode; not applied here.


def _pick_tiles(B, H, S, D, d_k, vmem_cap_bytes):
    """VMEM-capacity-aware (block_b, block_h) selection."""
    budget = int(0.70 * vmem_cap_bytes)

    def cost(bb, bh):
        out_blk = bb * bh * S * S * 4                       # f32 probs block
        return (2 * out_blk                                 # double-buffered output
                + 2 * 2 * bb * S * D * 2                    # q, k bf16, double-buffered
                + 2 * 2 * D * bh * d_k * 2                  # Wq, Wk bf16, double-buffered
                + 2 * bb * S * bh * d_k * (4 + 2)           # qp/kp f32 + bf16 copies
                + 5 * bb * S * S * 4)                       # per-head softmax temps + bias

    # block_h < H is only legal when the fused weight lane-block stays 128-aligned.
    head_opts = [bh for bh in range(H, 0, -1)
                 if H % bh == 0 and (bh == H or (bh * d_k) % 128 == 0)]
    batch_opts = [bb for bb in range(min(B, 16), 0, -1) if B % bb == 0]

    bb_best, bh_best = 1, head_opts[-1]
    found = False
    for bh in head_opts:                   # prefer all heads per step (lane-full proj)
        for bb in batch_opts:              # then as many batch rows as fit
            if cost(bb, bh) <= budget:
                bb_best, bh_best = bb, bh
                found = True
                break
        if found:
            break

    # Keep >= 2 grid steps so dual-TensorCore chips (v7x) can shard the grid.
    while (B // bb_best) * (H // bh_best) < 2:
        smaller = [bb for bb in batch_opts if bb < bb_best]
        if not smaller:
            break
        bb_best = smaller[0]
    return bb_best, bh_best


def multi_head_attention(query, key, mask, wq, bq, wk, bk, *, num_heads,
                         block_b=None, block_h=None):
    """query/key: (B, S, D); mask: (B, 1, S_max) with 1=keep / 0=mask;
    wq/wk: (D, D) torch nn.Linear layout (out, in); bq/bk: (D,)."""
    B, S, D = query.shape
    assert D % num_heads == 0
    d_k = D // num_heads
    scale = 1.0 / math.sqrt(d_k)

    try:
        vmem_cap = int(pltpu.get_tpu_info().vmem_capacity_bytes)
    except Exception:                      # conservative fallback (v7x-sized)
        vmem_cap = 64 * 1024 * 1024

    auto_bb, auto_bh = _pick_tiles(B, num_heads, S, D, d_k, vmem_cap)
    block_b = auto_bb if block_b is None else block_b
    block_h = auto_bh if block_h is None else block_h
    assert B % block_b == 0 and num_heads % block_h == 0

    # ---- host-side prep (mirrors the module's view/transpose plumbing) -----------
    # Fused weight slab (D, H*d_k): column h*d_k + c is output feature h*d_k + c of
    # the nn.Linear, so heads are contiguous lane groups.  1/sqrt(d_k) folded into
    # the query-side weights/bias; MXU operands narrowed to bf16 host-side.
    wq_slab = (wq.astype(jnp.float32).T * scale).astype(jnp.bfloat16)   # (D, H*d_k)
    wk_slab = wk.astype(jnp.float32).T.astype(jnp.bfloat16)             # (D, H*d_k)
    bq_slab = (bq.astype(jnp.float32) * scale).reshape(1, D)
    bk_slab = bk.astype(jnp.float32).reshape(1, D)
    # masked_fill(mask == 0, -1e9) as a precomputed additive bias.
    bias = (mask[:, :, :S].astype(jnp.float32) - 1.0) * jnp.float32(1e9)  # (B, 1, S)

    q_bf = query.astype(jnp.bfloat16)
    k_bf = key.astype(jnp.bfloat16)

    vmem_limit = max(32 * 1024 * 1024,
                     min(int(0.85 * vmem_cap), 100 * 1024 * 1024))

    kernel = functools.partial(_mha_kernel, d_k=d_k)

    return pl.pallas_call(
        kernel,
        out_shape=jax.ShapeDtypeStruct((B, num_heads, S, S), jnp.float32),
        grid_spec=pltpu.PrefetchScalarGridSpec(
            num_scalar_prefetch=0,
            grid=(B // block_b, num_heads // block_h),
            in_specs=[
                pl.BlockSpec((block_b, S, D), lambda b, h: (b, 0, 0)),       # query
                pl.BlockSpec((block_b, S, D), lambda b, h: (b, 0, 0)),       # key
                pl.BlockSpec((block_b, 1, S), lambda b, h: (b, 0, 0)),       # mask bias
                pl.BlockSpec((D, block_h * d_k), lambda b, h: (0, h)),       # Wq slab
                pl.BlockSpec((1, block_h * d_k), lambda b, h: (0, h)),       # bq slab
                pl.BlockSpec((D, block_h * d_k), lambda b, h: (0, h)),       # Wk slab
                pl.BlockSpec((1, block_h * d_k), lambda b, h: (0, h)),       # bk slab
            ],
            out_specs=pl.BlockSpec((block_b, block_h, S, S),
                                   lambda b, h: (b, h, 0, 0)),
        ),
        compiler_params=pltpu.CompilerParams(
            dimension_semantics=("parallel", "parallel"),
            vmem_limit_bytes=vmem_limit),
    )(q_bf, k_bf, bias, wq_slab, bq_slab, wk_slab, bk_slab)


def _reference(query, key, mask, wq, bq, wk, bk, num_heads):
    """Pure-JAX f32 reference matching the PyTorch forward."""
    B, S, D = query.shape
    d_k = D // num_heads
    mask = mask[:, :, :S]                                  # (B, 1, S)
    mask = mask[:, None, :, :]                             # unsqueeze(1) -> (B, 1, 1, S)
    qp = query @ wq.T + bq
    kp = key @ wk.T + bk
    qh = qp.reshape(B, S, num_heads, d_k).transpose(0, 2, 1, 3)
    kh = kp.reshape(B, S, num_heads, d_k).transpose(0, 2, 1, 3)
    scores = jnp.einsum('bhqd,bhkd->bhqk', qh, kh) / math.sqrt(d_k)
    scores = jnp.where(mask == 0, -1000000000.0, scores)
    return jax.nn.softmax(scores, axis=-1)


if __name__ == "__main__":
    B, S, D, H = 2, 8, 32, 4   # batch, seq, d_model, heads  (d_k = 8)

    key0 = jax.random.PRNGKey(0)
    kq, kk, kwq, kbq, kwk, kbk, km = jax.random.split(key0, 7)

    query = jax.random.normal(kq, (B, S, D), dtype=jnp.float32)
    key_in = jax.random.normal(kk, (B, S, D), dtype=jnp.float32)

    # Deterministic nn.Linear-style params (W: (out, in), b: (out,))
    bound = 1.0 / math.sqrt(D)
    wq = jax.random.uniform(kwq, (D, D), jnp.float32, -bound, bound)
    bq = jax.random.uniform(kbq, (D,), jnp.float32, -bound, bound)
    wk = jax.random.uniform(kwk, (D, D), jnp.float32, -bound, bound)
    bk = jax.random.uniform(kbk, (D,), jnp.float32, -bound, bound)

    # Binary mask over key positions, shape (B, 1, S) (1 = keep, 0 = mask out).
    mask = (jax.random.uniform(km, (B, 1, S)) > 0.2).astype(jnp.float32)
    # guarantee at least one valid key per batch so softmax is well-defined
    mask = mask.at[:, :, 0].set(1.0)

    out = multi_head_attention(query, key_in, mask, wq, bq, wk, bk, num_heads=H)
    out = jax.block_until_ready(out)

    ref = _reference(query, key_in, mask, wq, bq, wk, bk, H)
    # bf16 MXU operands -> looser tolerance than the pure-f32 reference.
    np.testing.assert_allclose(np.asarray(out), np.asarray(ref), rtol=2e-2, atol=2e-2)

    print("KERNEL_OK")
</pallas_src>

<mosaic_0001>
module attributes {stable_mosaic.version = 11 : i64} {
  func.func @_mha_kernel(%arg0: i32, %arg1: i32, %arg2: memref<1x8x32xbf16, #tpu.memory_space<vmem>>, %arg3: memref<1x8x32xbf16, #tpu.memory_space<vmem>>, %arg4: memref<1x1x8xf32, #tpu.memory_space<vmem>>, %arg5: memref<32x32xbf16, #tpu.memory_space<vmem>>, %arg6: memref<1x32xf32, #tpu.memory_space<vmem>>, %arg7: memref<32x32xbf16, #tpu.memory_space<vmem>>, %arg8: memref<1x32xf32, #tpu.memory_space<vmem>>, %arg9: memref<1x4x8x8xf32, #tpu.memory_space<vmem>>) attributes {dimension_semantics = [#tpu.dimension_semantics<parallel>, #tpu.dimension_semantics<parallel>], iteration_bounds = array<i64: 2, 1>, scalar_prefetch = 0 : i64, scratch_operands = 0 : i64, tpu.core_type = #tpu.core_type<tc>, window_params = [{transform_indices = @transform_0, window_bounds = array<i64: 1, 8, 32>}, {transform_indices = @transform_1, window_bounds = array<i64: 1, 8, 32>}, {transform_indices = @transform_2, window_bounds = array<i64: 1, 1, 8>}, {transform_indices = @transform_3, window_bounds = array<i64: 32, 32>}, {transform_indices = @transform_4, window_bounds = array<i64: 1, 32>}, {transform_indices = @transform_5, window_bounds = array<i64: 32, 32>}, {transform_indices = @transform_6, window_bounds = array<i64: 1, 32>}, {transform_indices = @transform_7, window_bounds = array<i64: 1, 4, 8, 8>}]} {
    %c0 = arith.constant 0 : index
    %c0_0 = arith.constant 0 : index
    %c0_1 = arith.constant 0 : index
    %0 = vector.load %arg2[%c0, %c0_0, %c0_1] : memref<1x8x32xbf16, #tpu.memory_space<vmem>>, vector<1x8x32xbf16>
    %1 = vector.shape_cast %0 : vector<1x8x32xbf16> to vector<8x32xbf16>
    %c0_2 = arith.constant 0 : index
    %c0_3 = arith.constant 0 : index
    %c0_4 = arith.constant 0 : index
    %2 = vector.load %arg3[%c0_2, %c0_3, %c0_4] : memref<1x8x32xbf16, #tpu.memory_space<vmem>>, vector<1x8x32xbf16>
    %3 = vector.shape_cast %2 : vector<1x8x32xbf16> to vector<8x32xbf16>
    %c0_5 = arith.constant 0 : index
    %c0_6 = arith.constant 0 : index
    %4 = vector.load %arg5[%c0_5, %c0_6] : memref<32x32xbf16, #tpu.memory_space<vmem>>, vector<32x32xbf16>
    %cst = arith.constant dense<0.000000e+00> : vector<8x32xf32>
    %5 = tpu.matmul %1, %4, %cst {dimension_numbers = #tpu.dot_dimension_numbers<[1], [0], [0], [1], [0, 0, 1, 1], [], []>} : vector<8x32xbf16>, vector<32x32xbf16>, vector<8x32xf32> -> vector<8x32xf32>
    %c0_7 = arith.constant 0 : index
    %c0_8 = arith.constant 0 : index
    %6 = vector.load %arg6[%c0_7, %c0_8] : memref<1x32xf32, #tpu.memory_space<vmem>>, vector<1x32xf32>
    %7 = vector.broadcast %6 : vector<1x32xf32> to vector<8x32xf32>
    %8 = arith.addf %5, %7 : vector<8x32xf32>
    %c0_9 = arith.constant 0 : index
    %c0_10 = arith.constant 0 : index
    %9 = vector.load %arg7[%c0_9, %c0_10] : memref<32x32xbf16, #tpu.memory_space<vmem>>, vector<32x32xbf16>
    %cst_11 = arith.constant dense<0.000000e+00> : vector<8x32xf32>
    %10 = tpu.matmul %3, %9, %cst_11 {dimension_numbers = #tpu.dot_dimension_numbers<[1], [0], [0], [1], [0, 0, 1, 1], [], []>} : vector<8x32xbf16>, vector<32x32xbf16>, vector<8x32xf32> -> vector<8x32xf32>
    %c0_12 = arith.constant 0 : index
    %c0_13 = arith.constant 0 : index
    %11 = vector.load %arg8[%c0_12, %c0_13] : memref<1x32xf32, #tpu.memory_space<vmem>>, vector<1x32xf32>
    %12 = vector.broadcast %11 : vector<1x32xf32> to vector<8x32xf32>
    %13 = arith.addf %10, %12 : vector<8x32xf32>
    %14 = arith.truncf %8 : vector<8x32xf32> to vector<8x32xbf16>
    %15 = arith.truncf %13 : vector<8x32xf32> to vector<8x32xbf16>
    %c0_14 = arith.constant 0 : index
    %c0_15 = arith.constant 0 : index
    %c0_16 = arith.constant 0 : index
    %16 = vector.load %arg4[%c0_14, %c0_15, %c0_16] : memref<1x1x8xf32, #tpu.memory_space<vmem>>, vector<1x1x8xf32>
    %17 = vector.shape_cast %16 : vector<1x1x8xf32> to vector<1x1x8xf32>
    %18 = vector.broadcast %17 : vector<1x1x8xf32> to vector<1x8x8xf32>
    %19 = vector.extract_strided_slice %14 {offsets = [0, 0], sizes = [8, 8], strides = [1, 1]} : vector<8x32xbf16> to vector<8x8xbf16>
    %20 = vector.shape_cast %19 : vector<8x8xbf16> to vector<1x8x8xbf16>
    %21 = vector.extract_strided_slice %15 {offsets = [0, 0], sizes = [8, 8], strides = [1, 1]} : vector<8x32xbf16> to vector<8x8xbf16>
    %22 = vector.shape_cast %21 : vector<8x8xbf16> to vector<1x8x8xbf16>
    "tpu.trace_start"() <{level = 10 : i32, message = "bqd,bkd->bqk"}> : () -> ()
    %cst_17 = arith.constant dense<0.000000e+00> : vector<1x8x8xf32>
    %23 = tpu.matmul %20, %22, %cst_17 {dimension_numbers = #tpu.dot_dimension_numbers<[2], [2], [1], [1], [0, 0, 0, 1, 1, 1], [0], [0]>} : vector<1x8x8xbf16>, vector<1x8x8xbf16>, vector<1x8x8xf32> -> vector<1x8x8xf32>
    "tpu.trace_stop"() : () -> ()
    %24 = arith.addf %23, %18 : vector<1x8x8xf32>
    %cst_18 = arith.constant dense<0xFF800000> : vector<1x8xf32>
    %25 = vector.multi_reduction <maximumf>, %24, %cst_18 [2] : vector<1x8x8xf32> to vector<1x8xf32>
    %26 = vector.shape_cast %25 : vector<1x8xf32> to vector<1x8x1xf32>
    %27 = vector.broadcast %26 : vector<1x8x1xf32> to vector<1x8x8xf32>
    %28 = arith.subf %24, %27 : vector<1x8x8xf32>
    %29 = math.exp %28 : vector<1x8x8xf32>
    %cst_19 = arith.constant dense<0.000000e+00> : vector<1x8xf32>
    %30 = vector.multi_reduction <add>, %29, %cst_19 [2] : vector<1x8x8xf32> to vector<1x8xf32>
    %31 = vector.shape_cast %30 : vector<1x8xf32> to vector<1x8x1xf32>
    %32 = tpu.reciprocal %31 {approx = true} : vector<1x8x1xf32> -> vector<1x8x1xf32>
    %33 = vector.broadcast %32 : vector<1x8x1xf32> to vector<1x8x8xf32>
    %34 = arith.mulf %29, %33 : vector<1x8x8xf32>
    %c0_20 = arith.constant 0 : index
    %c0_21 = arith.constant 0 : index
    %c0_22 = arith.constant 0 : index
    %c0_23 = arith.constant 0 : index
    %35 = vector.load %arg9[%c0_20, %c0_21, %c0_22, %c0_23] : memref<1x4x8x8xf32, #tpu.memory_space<vmem>>, vector<1x1x8x8xf32>
    %36 = vector.shape_cast %35 : vector<1x1x8x8xf32> to vector<1x8x8xf32>
    %37 = vector.shape_cast %34 : vector<1x8x8xf32> to vector<1x1x8x8xf32>
    tpu.vector_store %arg9[%c0_20, %c0_21, %c0_22, %c0_23], %37 {strides = array<i32>} : memref<1x4x8x8xf32, #tpu.memory_space<vmem>>, vector<1x1x8x8xf32>,
    %38 = vector.extract_strided_slice %14 {offsets = [0, 8], sizes = [8, 8], strides = [1, 1]} : vector<8x32xbf16> to vector<8x8xbf16>
    %39 = vector.shape_cast %38 : vector<8x8xbf16> to vector<1x8x8xbf16>
    %40 = vector.extract_strided_slice %15 {offsets = [0, 8], sizes = [8, 8], strides = [1, 1]} : vector<8x32xbf16> to vector<8x8xbf16>
    %41 = vector.shape_cast %40 : vector<8x8xbf16> to vector<1x8x8xbf16>
    "tpu.trace_start"() <{level = 10 : i32, message = "bqd,bkd->bqk"}> : () -> ()
    %cst_24 = arith.constant dense<0.000000e+00> : vector<1x8x8xf32>
    %42 = tpu.matmul %39, %41, %cst_24 {dimension_numbers = #tpu.dot_dimension_numbers<[2], [2], [1], [1], [0, 0, 0, 1, 1, 1], [0], [0]>} : vector<1x8x8xbf16>, vector<1x8x8xbf16>, vector<1x8x8xf32> -> vector<1x8x8xf32>
    "tpu.trace_stop"() : () -> ()
    %43 = arith.addf %42, %18 : vector<1x8x8xf32>
    %cst_25 = arith.constant dense<0xFF800000> : vector<1x8xf32>
    %44 = vector.multi_reduction <maximumf>, %43, %cst_25 [2] : vector<1x8x8xf32> to vector<1x8xf32>
    %45 = vector.shape_cast %44 : vector<1x8xf32> to vector<1x8x1xf32>
    %46 = vector.broadcast %45 : vector<1x8x1xf32> to vector<1x8x8xf32>
    %47 = arith.subf %43, %46 : vector<1x8x8xf32>
    %48 = math.exp %47 : vector<1x8x8xf32>
    %cst_26 = arith.constant dense<0.000000e+00> : vector<1x8xf32>
    %49 = vector.multi_reduction <add>, %48, %cst_26 [2] : vector<1x8x8xf32> to vector<1x8xf32>
    %50 = vector.shape_cast %49 : vector<1x8xf32> to vector<1x8x1xf32>
    %51 = tpu.reciprocal %50 {approx = true} : vector<1x8x1xf32> -> vector<1x8x1xf32>
    %52 = vector.broadcast %51 : vector<1x8x1xf32> to vector<1x8x8xf32>
    %53 = arith.mulf %48, %52 : vector<1x8x8xf32>
    %c0_27 = arith.constant 0 : index
    %c1 = arith.constant 1 : index
    %c0_28 = arith.constant 0 : index
    %c0_29 = arith.constant 0 : index
    %54 = vector.load %arg9[%c0_27, %c1, %c0_28, %c0_29] : memref<1x4x8x8xf32, #tpu.memory_space<vmem>>, vector<1x1x8x8xf32>
    %55 = vector.shape_cast %54 : vector<1x1x8x8xf32> to vector<1x8x8xf32>
    %56 = vector.shape_cast %53 : vector<1x8x8xf32> to vector<1x1x8x8xf32>
    tpu.vector_store %arg9[%c0_27, %c1, %c0_28, %c0_29], %56 {strides = array<i32>} : memref<1x4x8x8xf32, #tpu.memory_space<vmem>>, vector<1x1x8x8xf32>,
    %57 = vector.extract_strided_slice %14 {offsets = [0, 16], sizes = [8, 8], strides = [1, 1]} : vector<8x32xbf16> to vector<8x8xbf16>
    %58 = vector.shape_cast %57 : vector<8x8xbf16> to vector<1x8x8xbf16>
    %59 = vector.extract_strided_slice %15 {offsets = [0, 16], sizes = [8, 8], strides = [1, 1]} : vector<8x32xbf16> to vector<8x8xbf16>
    %60 = vector.shape_cast %59 : vector<8x8xbf16> to vector<1x8x8xbf16>
    "tpu.trace_start"() <{level = 10 : i32, message = "bqd,bkd->bqk"}> : () -> ()
    %cst_30 = arith.constant dense<0.000000e+00> : vector<1x8x8xf32>
    %61 = tpu.matmul %58, %60, %cst_30 {dimension_numbers = #tpu.dot_dimension_numbers<[2], [2], [1], [1], [0, 0, 0, 1, 1, 1], [0], [0]>} : vector<1x8x8xbf16>, vector<1x8x8xbf16>, vector<1x8x8xf32> -> vector<1x8x8xf32>
    "tpu.trace_stop"() : () -> ()
    %62 = arith.addf %61, %18 : vector<1x8x8xf32>
    %cst_31 = arith.constant dense<0xFF800000> : vector<1x8xf32>
    %63 = vector.multi_reduction <maximumf>, %62, %cst_31 [2] : vector<1x8x8xf32> to vector<1x8xf32>
    %64 = vector.shape_cast %63 : vector<1x8xf32> to vector<1x8x1xf32>
    %65 = vector.broadcast %64 : vector<1x8x1xf32> to vector<1x8x8xf32>
    %66 = arith.subf %62, %65 : vector<1x8x8xf32>
    %67 = math.exp %66 : vector<1x8x8xf32>
    %cst_32 = arith.constant dense<0.000000e+00> : vector<1x8xf32>
    %68 = vector.multi_reduction <add>, %67, %cst_32 [2] : vector<1x8x8xf32> to vector<1x8xf32>
    %69 = vector.shape_cast %68 : vector<1x8xf32> to vector<1x8x1xf32>
    %70 = tpu.reciprocal %69 {approx = true} : vector<1x8x1xf32> -> vector<1x8x1xf32>
    %71 = vector.broadcast %70 : vector<1x8x1xf32> to vector<1x8x8xf32>
    %72 = arith.mulf %67, %71 : vector<1x8x8xf32>
    %c0_33 = arith.constant 0 : index
    %c2 = arith.constant 2 : index
    %c0_34 = arith.constant 0 : index
    %c0_35 = arith.constant 0 : index
    %73 = vector.load %arg9[%c0_33, %c2, %c0_34, %c0_35] : memref<1x4x8x8xf32, #tpu.memory_space<vmem>>, vector<1x1x8x8xf32>
    %74 = vector.shape_cast %73 : vector<1x1x8x8xf32> to vector<1x8x8xf32>
    %75 = vector.shape_cast %72 : vector<1x8x8xf32> to vector<1x1x8x8xf32>
    tpu.vector_store %arg9[%c0_33, %c2, %c0_34, %c0_35], %75 {strides = array<i32>} : memref<1x4x8x8xf32, #tpu.memory_space<vmem>>, vector<1x1x8x8xf32>,
    %76 = vector.extract_strided_slice %14 {offsets = [0, 24], sizes = [8, 8], strides = [1, 1]} : vector<8x32xbf16> to vector<8x8xbf16>
    %77 = vector.shape_cast %76 : vector<8x8xbf16> to vector<1x8x8xbf16>
    %78 = vector.extract_strided_slice %15 {offsets = [0, 24], sizes = [8, 8], strides = [1, 1]} : vector<8x32xbf16> to vector<8x8xbf16>
    %79 = vector.shape_cast %78 : vector<8x8xbf16> to vector<1x8x8xbf16>
    "tpu.trace_start"() <{level = 10 : i32, message = "bqd,bkd->bqk"}> : () -> ()
    %cst_36 = arith.constant dense<0.000000e+00> : vector<1x8x8xf32>
    %80 = tpu.matmul %77, %79, %cst_36 {dimension_numbers = #tpu.dot_dimension_numbers<[2], [2], [1], [1], [0, 0, 0, 1, 1, 1], [0], [0]>} : vector<1x8x8xbf16>, vector<1x8x8xbf16>, vector<1x8x8xf32> -> vector<1x8x8xf32>
    "tpu.trace_stop"() : () -> ()
    %81 = arith.addf %80, %18 : vector<1x8x8xf32>
    %cst_37 = arith.constant dense<0xFF800000> : vector<1x8xf32>
    %82 = vector.multi_reduction <maximumf>, %81, %cst_37 [2] : vector<1x8x8xf32> to vector<1x8xf32>
    %83 = vector.shape_cast %82 : vector<1x8xf32> to vector<1x8x1xf32>
    %84 = vector.broadcast %83 : vector<1x8x1xf32> to vector<1x8x8xf32>
    %85 = arith.subf %81, %84 : vector<1x8x8xf32>
    %86 = math.exp %85 : vector<1x8x8xf32>
    %cst_38 = arith.constant dense<0.000000e+00> : vector<1x8xf32>
    %87 = vector.multi_reduction <add>, %86, %cst_38 [2] : vector<1x8x8xf32> to vector<1x8xf32>
    %88 = vector.shape_cast %87 : vector<1x8xf32> to vector<1x8x1xf32>
    %89 = tpu.reciprocal %88 {approx = true} : vector<1x8x1xf32> -> vector<1x8x1xf32>
    %90 = vector.broadcast %89 : vector<1x8x1xf32> to vector<1x8x8xf32>
    %91 = arith.mulf %86, %90 : vector<1x8x8xf32>
    %c0_39 = arith.constant 0 : index
    %c3 = arith.constant 3 : index
    %c0_40 = arith.constant 0 : index
    %c0_41 = arith.constant 0 : index
    %92 = vector.load %arg9[%c0_39, %c3, %c0_40, %c0_41] : memref<1x4x8x8xf32, #tpu.memory_space<vmem>>, vector<1x1x8x8xf32>
    %93 = vector.shape_cast %92 : vector<1x1x8x8xf32> to vector<1x8x8xf32>
    %94 = vector.shape_cast %91 : vector<1x8x8xf32> to vector<1x1x8x8xf32>
    tpu.vector_store %arg9[%c0_39, %c3, %c0_40, %c0_41], %94 {strides = array<i32>} : memref<1x4x8x8xf32, #tpu.memory_space<vmem>>, vector<1x1x8x8xf32>,
    return
  }
  func.func @transform_0(%arg0: i32, %arg1: i32) -> (i32, i32, i32) {
    %c0_i32 = arith.constant 0 : i32
    %c0_i32_0 = arith.constant 0 : i32
    %c0_i32_1 = arith.constant 0 : i32
    return %arg0, %c0_i32, %c0_i32_0 : i32, i32, i32
  }
  func.func @transform_1(%arg0: i32, %arg1: i32) -> (i32, i32, i32) {
    %c0_i32 = arith.constant 0 : i32
    %c0_i32_0 = arith.constant 0 : i32
    %c0_i32_1 = arith.constant 0 : i32
    return %arg0, %c0_i32, %c0_i32_0 : i32, i32, i32
  }
  func.func @transform_2(%arg0: i32, %arg1: i32) -> (i32, i32, i32) {
    %c0_i32 = arith.constant 0 : i32
    %c0_i32_0 = arith.constant 0 : i32
    %c0_i32_1 = arith.constant 0 : i32
    return %arg0, %c0_i32, %c0_i32_0 : i32, i32, i32
  }
  func.func @transform_3(%arg0: i32, %arg1: i32) -> (i32, i32) {
    %c0_i32 = arith.constant 0 : i32
    %c0_i32_0 = arith.constant 0 : i32
    return %c0_i32, %arg1 : i32, i32
  }
  func.func @transform_4(%arg0: i32, %arg1: i32) -> (i32, i32) {
    %c0_i32 = arith.constant 0 : i32
    %c0_i32_0 = arith.constant 0 : i32
    return %c0_i32, %arg1 : i32, i32
  }
  func.func @transform_5(%arg0: i32, %arg1: i32) -> (i32, i32) {
    %c0_i32 = arith.constant 0 : i32
    %c0_i32_0 = arith.constant 0 : i32
    return %c0_i32, %arg1 : i32, i32
  }
  func.func @transform_6(%arg0: i32, %arg1: i32) -> (i32, i32) {
    %c0_i32 = arith.constant 0 : i32
    %c0_i32_0 = arith.constant 0 : i32
    return %c0_i32, %arg1 : i32, i32
  }
  func.func @transform_7(%arg0: i32, %arg1: i32) -> (i32, i32, i32, i32) {
    %c0_i32 = arith.constant 0 : i32
    %c0_i32_0 = arith.constant 0 : i32
    %c0_i32_1 = arith.constant 0 : i32
    return %arg0, %arg1, %c0_i32, %c0_i32_0 : i32, i32, i32, i32
  }
}

</mosaic_0001>

<bundles_post_ra>
// kernel: tpu_custom_call.1
= control target key start
LH: loop header
LB: loop body
LE: loop exit
PB: predicated region body
PF: predicated region fallthrough
CT: control target
= control target key end

     0   :  { %s1554_s0 = inlined_call_operand.hbm [shape: bf16[2,8,32], index: 0, kind: input, shape index: {}]   ;;  %s1555_s1 = inlined_call_operand.hbm [shape: bf16[2,8,32], index: 1, kind: input, shape index: {}]   ;;  %s1556_s2 = inlined_call_operand.hbm [shape: f32[2,1,8], index: 2, kind: input, shape index: {}]   ;;  %s1557_s3 = inlined_call_operand.hbm [shape: bf16[32,32], index: 3, kind: input, shape index: {}]   ;;  %s1558_s4 = inlined_call_operand.vmem [shape: f32[1,32], index: 4, kind: input, shape index: {}]   ;;  %s1559_s5 = inlined_call_operand.hbm [shape: bf16[32,32], index: 5, kind: input, shape index: {}]   ;;  %s1560_s6 = inlined_call_operand.vmem [shape: f32[1,32], index: 6, kind: input, shape index: {}]   ;;  %s1561_s7 = inlined_call_operand.hbm [shape: f32[2,4,8,8], index: 7, kind: output, shape index: {}]  }
   0x1   :  { %1573 = sst [smem:[#allocation24_spill]] %s1555_s1 }
   0x2   :  { %1574 = sst [smem:[#allocation25_spill]] %s1557_s3 }
   0x3   :  { %1575 = sst [smem:[#allocation26_spill]] %s1559_s5 }
   0x4   :  { %1576 = sst [smem:[#allocation27_spill]] %s1561_s7 }
   0x5   :  { %12 = vsyncpa [#allocation3], 0 }
   0x6   :  { %14 = vsyncpa [#allocation3 + $0x1], 0 }
   0x7   :  { %15 = vsyncpa [#allocation6], 0 }
   0x8   :  { %17 = vsyncpa [#allocation6 + $0x1], 0 }
   0x9   :  { %18 = vsyncpa [#allocation9], 0 }
   0xa   :  { %19 = vsyncpa [#allocation4], 0 }
   0xb   :  { %21 = vsyncpa [#allocation4 + $0x1], 0  ;;  %s1336_s24 = smov 0   ;;  %s1338_s25 = smov 0  }
   0xc   :  { %s1340_s26 = smov 0   ;;  %s1342_s27 = smov 0  }
   0xd   :  { %s1344_s28 = smov 0   ;;  %s1346_s29 = smov 0  }
   0xe LB: > { %1577 = sst [smem:[#allocation16_spill]] %s1265_s24  ;;  %s1367_s30 = sadd.s32 4294967295, %s1285_s29   ;;  %s1285_s29 = sphi %s1346_s29, %s27_s29   ;;  %s1281_s28 = sphi %s1344_s28, %s1611_s28   ;;  %s1277_s27 = sphi %s1342_s27, %s1610_s27   ;;  %s1273_s26 = sphi %s1340_s26, %s1606_s26   ;;  %s1269_s25 = sphi %s1338_s25, %s1609_s25   ;;  %s1265_s24 = sphi %s1336_s24, %s1608_s24  }
   0xf   : > { %1578 = sst [smem:[#allocation17_spill]] %s1273_s26  ;;  %p875_p0 = scmp.ge.s32.totalorder %s1285_s29, 1 }
  0x10   : > { %1579 = sst [smem:[#allocation18_spill]] %s1277_s27  ;;  %p60_p1 = scmp.eq.s32.totalorder %s1367_s30, 0 }
  0x11   : > { %1580 = sst [smem:[#allocation19_spill]] %s1285_s29  ;;  %p254_p2 = scmp.lt.s32.totalorder %s1285_s29, 3 }
  0x12   : > { %s1581_s3 = sld [smem:[#allocation25_spill]]  ;;  %s1287_s12 = smov [#allocation8]  }
  0x13   : > { %p1375_p3 = pnand %p875_p0, %p254_p2  ;;  %s269_s13 = sshll.u32 %s1287_s12, 4  ;;  %s270_s13 = int_to_ptr.vmem [resolvable:$true] %s269_s13 }
  0x14   : > { %s1562_s15 = smov 64   ;;  %s1563_s16 = smov 4  }
  0x15   : > { %p942_p4 = pneg %p1375_p3  ;;  %s874_s17 = sadd.s32 4294967294, %s1285_s29  }
  0x16   : > { %s39_s18 = sadd.s32 1, %s1281_s28  ;;  %s46_s19 = sadd.s32 1, %s1273_s26 }
  0x17   : > { %p1383_p5 = pnand %p942_p4, %p60_p1  ;;  %p41_p7 = scmp.ge.s32.totalorder %s39_s18, 2 }
  0x18   : > { %s267_s10 = sshll.u32 %s1581_s3, 4  ;;  %p53_p8 = scmp.ne.s32.totalorder %s1273_s26, %s1269_s25  ;;  %s268_s10 = int_to_ptr.hbm [resolvable:$true] %s267_s10 }
  0x19   : > { %945 = dma.hbm_to_vmem [thread:$0]  (!%p1383_p5), %s268_s10, 256, %s270_s13, [#allocation9], %s1562_s15, %s1562_s15, %s1563_s16  }
  0x1a   : > { %p54_p9 = scmp.eq.s32.totalorder %s1285_s29, 0  ;;  %p59_p10 = scmp.ne.s32.totalorder %s1269_s25, %s1265_s24 }
  0x1b   : > { %s1613_s18 = smov (%p41_p7, %s39_s18), 0  ;;  %p241_p13 = scmp.eq.s32.totalorder %s1367_s30, 1 }
  0x1c   : > { %1584 = sst [smem:[#allocation20_spill]] %s1613_s18  ;;  %p1403_p11 = por %p54_p9, %p53_p8 }
  0x1d   : > { %p1409_p12 = por %p60_p1, %p59_p10  ;;  %s43_s22 = ssub.s32 %s1281_s28, %s1613_s18 }
  0x1e   : > { %p44_p0 = scmp.eq.s32.totalorder %s43_s22, 0  ;;  %p247_p2 = scmp.eq.s32.totalorder %s874_s17, 1 }
  0x1f   : > { %p1416_p4 = por %p241_p13, %p53_p8  ;;  %p965_p7 = scmp.lt.s32.totalorder %s1285_s29, 2 }
  0x20   : > { %s1422_s8 = scalar_select %p44_p0, %s1273_s26, %s46_s19  }
  0x21   : > { %s1587_s23 = scalar_select %p1416_p4, 1, 0 }
  0x22   : > { %1589 = sst [smem:[#allocation22_spill]] %s1422_s8  ;;  %p1424_p9 = por %p247_p2, %p59_p10 }
  0x23   : > { %1588 = sst [smem:[#allocation21_spill]] %s1587_s23  ;;  %s1429_s10 = sand.u32 1, %s1273_s26  }
  0x24   : > { %s1590_s9 = scalar_select %p1424_p9, 1, 0 }
  0x25   : > { %s881_s12 = sshll.u32 %s1429_s10, 2  ;;  %s882_s13 = sshll.u32 %s1281_s28, 2 }
  0x26   : > { %1591 = sst [smem:[#allocation23_spill]] %s1590_s9  ;;  %p1435_p6 = pnand %p965_p7, %p1403_p11 }
  0x27   : > { %s330_s22 = sand.u32 1, %s1285_s29   ;;  %s1593_s1 = sld [smem:[#allocation24_spill]] }
  0x28   : > { %s334_s18 = scalar_lea.vmem [#allocation5], %s881_s12  ;;  %s331_s26 = scalar_lea.sflag [#allocation6], %s330_s22 }
  0x29   : > { %s342_s8 = sshll.u32 %s334_s18, 4  ;;  %s1594_s5 = sld [smem:[#allocation26_spill]]  ;;  %s343_s8 = int_to_ptr.vmem [resolvable:$true] %s342_s8 }
  0x2a   : > { %s1290_s29 = smov [#allocation10]   ;;  %s1596_s18 = smov 64  }
  0x2b   : > { %s291_s15 = sshll.u32 %s1290_s29, 4  ;;  %s312_s9 = scalar_lea.sflag [#allocation3], %s1429_s10  ;;  %s292_s15 = int_to_ptr.vmem [resolvable:$true] %s291_s15 }
  0x2c   : > { %s355_s14 = scalar_lea.hbm %s1556_s2, %s1281_s28  ;;  %s352_s23 = scalar_lea.vmem [#allocation7], %s1429_s10 }
  0x2d   : > { %s338_s16 = scalar_lea.hbm %s1593_s1, %s882_s13  ;;  %s319_s1 = scalar_lea.hbm %s1554_s0, %s882_s13 }
  0x2e   : > { %s340_s3 = sshll.u32 %s338_s16, 4  ;;  %s1595_s16 = smov 4   ;;  %s341_s3 = int_to_ptr.hbm [resolvable:$true] %s340_s3 }
  0x2f   : > { %955 = dma.hbm_to_vmem [thread:$0]  (!%p1435_p6), %s341_s3, 64, %s343_s8, %s331_s26  }
  0x30   : > { %s289_s24 = sshll.u32 %s1594_s5, 4  ;;  %s321_s3 = sshll.u32 %s319_s1, 4  ;;  %s290_s24 = int_to_ptr.hbm [resolvable:$true] %s289_s24  ;;  %s322_s3 = int_to_ptr.hbm [resolvable:$true] %s321_s3 }
  0x31   : > { %948 = dma.hbm_to_vmem [thread:$0]  (!%p1383_p5), %s290_s24, 256, %s292_s15, [#allocation9], %s1596_s18, %s1596_s18, %s1595_s16  }
  0x32   : > { %s315_s8 = scalar_lea.vmem [#allocation2], %s881_s12  ;;  %s357_s5 = sshll.u32 %s355_s14, 4  ;;  %s358_s5 = int_to_ptr.hbm [resolvable:$true] %s357_s5 }
  0x33   : > { %s323_s7 = sshll.u32 %s315_s8, 4  ;;  %s359_s27 = sshll.u32 %s352_s23, 4  ;;  %s324_s7 = int_to_ptr.vmem [resolvable:$true] %s323_s7  ;;  %s360_s27 = int_to_ptr.vmem [resolvable:$true] %s359_s27 }
  0x34   : > { %952 = dma.hbm_to_vmem [thread:$0]  (!%p1435_p6), %s322_s3, 64, %s324_s7, %s312_s9  }
  0x35   : > { %958 = dma.hbm_to_vmem [thread:$0]  (!%p1435_p6), %s358_s5, 16, %s360_s27, %s331_s26  }
  0x36   : > { %368 = sbr.rel (%p1375_p3) target bundleno = 732 (0x2dc), region = 48  ;;  %s1469_s1 = sand.u32 (!%p1375_p3), 1, %s1269_s25  }
  0x37   : > { %s886_s7 = sshll.u32 (!%p1375_p3), %s1469_s1, 2  ;;  %s371_s24 = scalar_lea.sflag (!%p1375_p3), [#allocation3], %s1469_s1 }
  0x38   : > { %s374_s12 = scalar_lea.vmem (!%p1375_p3), [#allocation2], %s886_s7 }
  0x3b   : > { %1248 = dma.done.wait (%p1409_p12), %s371_s24, 64  }
  0x3c   : > { %1250 = vsyncadd (%p1409_p12), %s371_s24, 4294967232  ;;  %s380_s5 = sand.u32 1, %s1367_s30   ;;  %s384_s27 = scalar_lea.vmem [#allocation5], %s886_s7 }
  0x3d   : > { %s381_s26 = scalar_lea.sflag [#allocation6], %s380_s5 }
  0x3e   : > { %1252 = dma.done.wait (%p1409_p12), %s381_s26, 80  }
  0x3f   : > { %1254 = vsyncadd (%p1409_p12), %s381_s26, 4294967216  ;;  %s393_s11 = scalar_lea.vmem [#allocation7], %s1469_s1 }
  0x40   : > { %1256 = dma.done.wait (%p60_p1), [#allocation9], 512  }
  0x41   : > { %1258 = vsyncadd (%p60_p1), [#allocation9], 4294966784  ;;  %v924_v0 = vld [vmem:[#allocation10 + $0x8] sm:$0xff]  ;;  %v922_v1 = vld [vmem:[#allocation8 + $0x8] sm:$0xff]  ;;  %vm480_vm0 = vcmask 261120   ;;  %vm539_vm1 = vcmask 64512  }
  0x42   : > { %526 = vmatpush.bf16.msra.mxu1 %v924_v0  ;;  %v923_v2 = vld [vmem:[#allocation10] sm:$0xff]  ;;  %490 = vmatpush.bf16.msra.mxu0 %v922_v1  ;;  %v921_v3 = vld [vmem:[#allocation8] sm:$0xff]  ;;  %v1026_v6 = vld [vmem:[%s1560_s6] ss:$0 sm:$0xff]  ;;  %s1291_s13 = smov 104   ;;  %s1292_s17 = smov 120  }
  0x43   : > { %v459_v4 = vld [vmem:[%s384_s27] sm:$0xf]  ;;  %v458_v5 = vld [vmem:[%s374_s12] sm:$0xf]  ;;  %s1293_s15 = smov 112   ;;  %s890_s16 = sshll.u32 %s1469_s1, 5 }
  0x44   : > { %v1027_v7 = vld [vmem:[%s1558_s4] ss:$0 sm:$0xff]  ;;  %s1597_s18 = sld [smem:[#allocation18_spill]]  ;;  %s449_s19 = scalar_lea.vmem [#allocation11], %s890_s16 }
  0x45   : > { %v1028_v30 = vld [vmem:[%s393_s11] ss:$0 sm:$0xff]  ;;  %s1599_s29 = sld [smem:[#allocation27_spill]]  ;;  %s700_s7 = sshll.u32 %s449_s19, 4  ;;  %s701_s7 = int_to_ptr.vmem [resolvable:$true] %s700_s7 }
  0x46   : > { %527 = vmatpush.bf16.msra.mxu1 %v923_v2  ;;  %491 = vmatpush.bf16.msra.mxu0 %v921_v3  ;;  %s686_s12 = scalar_lea.sflag [#allocation4], %s1469_s1 }
  0x49   : > { %908 = vmatmul.msk.bf16.vlgmr.msra.gmra.mxu1 %vm480_vm0, %v459_v4  ;;  %899 = vmatmul.msk.bf16.vlgmr.msra.gmra.mxu0 %vm480_vm0, %v458_v5 }
  0x4a   : > { %s925_s22 = sshll.u32 %s1597_s18, 5 }
  0x4b   : > { %s1600_s20 = smov %s1599_s29  ;;  %s699_s14 = scalar_lea.hbm %s1599_s29, %s925_s22 }
  0x4c   : > { %s702_s24 = sshll.u32 %s699_s14, 4  ;;  %s1215_s21 = scalar_lea.hbm %s1600_s20, 64  ;;  %s703_s24 = int_to_ptr.hbm [resolvable:$true] %s702_s24 }
  0x4d   : > { %s1209_s5 = sshra.s32 %s703_s24, 4  ;;  %s1210_s5 = int_to_ptr.hbm [resolvable:$true] %s1209_s5 }
  0x4e   : > { %s1211_s26 = scalar_lea.hbm %s1210_s5, 32  ;;  %p1216_p6 = scmp.lt.s32.totalorder %s1210_s5, %s1600_s20 }
  0x4f   : > { %p1212_p1 = scmp.ne.s32.totalorder %s1210_s5, %s1211_s26  ;;  %p1217_p8 = scmp.lt.s32.totalorder %s1215_s21, %s1211_s26 }
  0x51   : > { %p1213_p3 = pnand %p1212_p1, %p1416_p4  ;;  %p1218_p10 = por %p1217_p8, %p1216_p6 }
  0x53   : > { %p1214_p5 = pneg %p1213_p3 }
  0x55   : > { %p1219_p11 = pnand %p1218_p10, %p1214_p5 }
  0xc6   : > { %v529_v8 = vpop.f32.mrf.mxu1  ;;  %v493_v10 = vpop.f32.mrf.mxu0 }
  0xc7   : > { %v530_v9 = vadd.f32 %v1026_v6, %v529_v8  ;;  %v494_v11 = vadd.f32 %v1027_v7, %v493_v10 }
  0xc9   : > { %v534_v12 = vpack.c.bf16 %v530_v9, %v530_v9  ;;  %v533_v13 = vpack.c.bf16 %v494_v11, %v494_v11 }
  0xcb   : > { %v577_v14 = vunpack.c.l.b16 %v534_v12  ;;  %v544_v15 = vsel %vm539_vm1, %v534_v12, 0  ;;  %v572_v16 = vunpack.c.l.b16 %v533_v13 }
  0xcc   : > { %553 = vmatpush.bf16.xpose.msra.mxu2 %v544_v15 }
  0xcd   : > { %v578_v17 = vpack.c.b16 %v577_v14, %v577_v14  ;;  %v573_v18 = vpack.c.b16 %v572_v16, %v572_v16 }
  0xce   : > { %v531_v19 = vpop.f32.mrf.mxu1  ;;  %v495_v20 = vpop.f32.mrf.mxu0 }
  0xcf   : > { %651 = vrot.lane.b32.xlu1 %v578_v17, %s1291_s13  ;;  %579 = vrot.lane.b32.xlu0 %v578_v17, %s1292_s17 }
  0xd0   : > { %613 = vrot.lane.b32.xlu2 %v573_v18, %s1293_s15 }
  0xd3   : > { %909 = vmatmul.msk.bf16.vlgmr.msra.gmra.mxu2 %vm539_vm1, %v533_v13 }
  0xd7   : > { %615 = vrot.lane.b32.xlu0 %v578_v17, %s1293_s15  ;;  %574 = vrot.lane.b32.xlu1 %v573_v18, %s1292_s17 }
  0xd8   : > { %649 = vrot.lane.b32.xlu2 %v573_v18, %s1291_s13 }
 0x12a   : > { %v614_v21 = vpop.permute.xlu2 %613 }
 0x132   : > { %v650_v26 = vpop.permute.xlu2 %649 }
 0x141   : > { %v652_v22 = vpop.permute.xlu1 %651  ;;  %v580_v23 = vpop.permute.xlu0 %579 }
 0x142   : > { %v585_v24 = vsel %vm539_vm1, %v580_v23, 0  ;;  %v657_v25 = vsel %vm539_vm1, %v652_v22, 0 }
 0x143   : > { %594 = vmatpush.bf16.xpose.msra.mxu3 %v585_v24  ;;  %666 = vmatpush.bf16.xpose.msrb.mxu1 %v657_v25 }
 0x149   : > { %v616_v27 = vpop.permute.xlu0 %615  ;;  %v575_v28 = vpop.permute.xlu1 %574 }
 0x14a   : > { %910 = vmatmul.msk.bf16.vlgmr.msra.gmra.mxu3 %vm539_vm1, %v575_v28  ;;  %914 = vmatmul.msk.bf16.vlgmr.msrb.gmra.mxu1 %vm539_vm1, %v650_v26  ;;  %v621_v29 = vsel %vm539_vm1, %v616_v27, 0 }
 0x14b   : > { %630 = vmatpush.bf16.xpose.msrb.mxu0 %v621_v29 }
 0x152   : > { %912 = vmatmul.msk.bf16.vlgmr.msrb.gmra.mxu0 %vm539_vm1, %v614_v21 }
 0x156   : > { %v555_v31 = vpop.f32.mrf.mxu2 }
 0x157   : > { %v556_v32 = vadd.f32 %v1028_v30, %v555_v31 }
 0x159   : > { %v559_v33 = vsel %vm539_vm1, %v556_v32, -inf }
 0x15a   : > { %560 = vmax.xlane.f32.xlu0 %v559_v33 }
 0x15e   : > { %v557_v34 = vpop.f32.mrf.mxu2 }
 0x1c7   : > { %v668_v35 = vpop.f32.mrf.mxu1 }
 0x1c8   : > { %v669_v47 = vadd.f32 %v1028_v30, %v668_v35 }
 0x1ca   : > { %v672_v51 = vsel %vm539_vm1, %v669_v47, -inf }
 0x1cd   : > { %v596_v36 = vpop.f32.mrf.mxu3  ;;  %v561_v37 = vpop.xlane.xlu0 %560 }
 0x1ce   : > { %v597_v38 = vadd.f32 %v1028_v30, %v596_v36  ;;  %v562_v39 = vsub.f32 %v556_v32, %v561_v37 }
 0x1cf   : > { %v632_v40 = vpop.f32.mrf.mxu0  ;;  %v670_v41 = vpop.f32.mrf.mxu1 }
 0x1d0   : > { %v563_v42 = vmul.f32 1.442695, %v562_v39  ;;  %v633_v43 = vadd.f32 %v1028_v30, %v632_v40  ;;  %v600_v44 = vsel %vm539_vm1, %v597_v38, -inf }
 0x1d1   : > { %601 = vmax.xlane.f32.xlu1 %v600_v44 }
 0x1d2   : > { %1029 = vpow2.f32 %v563_v42  ;;  %v636_v45 = vsel %vm539_vm1, %v633_v43, -inf }
 0x1d3   : > { %637 = vmax.xlane.f32.xlu2 %v636_v45 }
 0x1d5   : > { %v598_v46 = vpop.f32.mrf.mxu3 }
 0x1d7   : > { %v634_v48 = vpop.f32.mrf.mxu0 }
 0x1d8   : > { %v1030_v49 = vpop.eup %1029 }
 0x1d9   : > { %v565_v50 = vsel %vm539_vm1, %v1030_v49, 0.0 }
 0x1da   : > { %566 = vadd.xlane.f32.xlu0 %v565_v50 }
 0x1db   : > { %673 = vmax.xlane.f32.xlu2 %v672_v51 }
 0x244   : > { %v602_v52 = vpop.xlane.xlu1 %601 }
 0x245   : > { %v603_v53 = vsub.f32 %v597_v38, %v602_v52 }
 0x246   : > { %v638_v54 = vpop.xlane.xlu2 %637 }
 0x247   : > { %v604_v55 = vmul.f32 1.442695, %v603_v53  ;;  %v639_v56 = vsub.f32 %v633_v43, %v638_v54 }
 0x249   : > { %1031 = vpow2.f32 %v604_v55  ;;  %v640_v57 = vmul.f32 1.442695, %v639_v56 }
 0x24b   : > { %1033 = vpow2.f32 %v640_v57 }
 0x24d   : > { %v567_v58 = vpop.xlane.xlu0 %566 }
 0x24e   : > { %1035 = vrcp.f32 %v567_v58  ;;  %v674_v59 = vpop.xlane.xlu2 %673 }
 0x24f   : > { %v1032_v60 = vpop.eup %1031  ;;  %v675_v61 = vsub.f32 %v669_v47, %v674_v59 }
 0x250   : > { %v606_v62 = vsel %vm539_vm1, %v1032_v60, 0.0 }
 0x251   : > { %v1034_v63 = vpop.eup %1033  ;;  %v676_v0 = vmul.f32 1.442695, %v675_v61  ;;  %607 = vadd.xlane.f32.xlu1 %v606_v62 }
 0x252   : > { %v642_v1 = vsel %vm539_vm1, %v1034_v63, 0.0 }
 0x253   : > { %1037 = vpow2.f32 %v676_v0  ;;  %643 = vadd.xlane.f32.xlu2 %v642_v1 }
 0x254   : > { %v1036_v2 = vpop.eup %1035 }
 0x255   : > { %v569_v3 = vmul.f32 %v1036_v2, %v1030_v49 }
 0x257   : > { %570 = vst.msk [vmem:[%s449_s19] sm:$0xff] %vm539_vm1, %v569_v3 }
 0x259   : > { %v1038_v4 = vpop.eup %1037 }
 0x25a   : > { %v678_v5 = vsel %vm539_vm1, %v1038_v4, 0.0 }
 0x25b   : > { %679 = vadd.xlane.f32.xlu0 %v678_v5 }
 0x2c4   : > { %v608_v6 = vpop.xlane.xlu1 %607 }
 0x2c5   : > { %1039 = vrcp.f32 %v608_v6 }
 0x2c6   : > { %v644_v7 = vpop.xlane.xlu2 %643 }
 0x2c7   : > { %1041 = vrcp.f32 %v644_v7 }
 0x2cb   : > { %v1040_v8 = vpop.eup %1039 }
 0x2cc   : > { %v610_v9 = vmul.f32 %v1040_v8, %v1032_v60 }
 0x2cd   : > { %v1042_v10 = vpop.eup %1041 }
 0x2ce   : > { %911 = vst.msk [vmem:[%s449_s19 + $0x8] sm:$0xff] %vm539_vm1, %v610_v9  ;;  %v646_v11 = vmul.f32 %v1042_v10, %v1034_v63  ;;  %v680_v12 = vpop.xlane.xlu0 %679 }
 0x2cf   : > { %1043 = vrcp.f32 %v680_v12 }
 0x2d0   : > { %913 = vst.msk [vmem:[%s449_s19 + $0x10] sm:$0xff] %vm539_vm1, %v646_v11 }
 0x2d5   : > { %v1044_v13 = vpop.eup %1043 }
 0x2d6   : > { %v682_v14 = vmul.f32 %v1044_v13, %v1038_v4 }
 0x2d8   : > { %915 = vst.msk [vmem:[%s449_s19 + $0x18] sm:$0xff] %vm539_vm1, %v682_v14 }
 0x2d9   : > { %1222 = shalt.err (!%p1219_p11)
}
 0x2da   : > { %s1294_s1 = smov 128   ;;  %s1295_s30 = smov 8  }
 0x2db   : > { %940 = dma.vmem_to_hbm [thread:$0]  (%p1416_p4), %s701_s7, 512, %s703_s24, %s686_s12, %s1294_s1, %s1294_s1, %s1295_s30  }
 0x2dc PF: > { %s1601_s13 = sld [smem:[#allocation16_spill]] }
 0x2dd   : > { %s1603_s15 = sld [smem:[#allocation19_spill]] }
 0x2e2   : > { %s717_s16 = sand.u32 1, %s1601_s13  }
 0x2e3   : > { %p1604_p12 = scmp.ge.s32.totalorder %s1603_s15, 2  ;;  %s718_s18 = scalar_lea.sflag [#allocation4], %s717_s16 }
 0x2e5   : > { %p960_p13 = pnand %p1604_p12, %p1424_p9 }
 0x2e7   : > { %p961_p0 = pneg %p960_p13 }
 0x2e9   : > { %1260 = dma.done.wait (%p961_p0), %s718_s18, 512  }
 0x2ea   : > { %1262 = vsyncadd (%p961_p0), %s718_s18, 4294966784  ;;  %s27_s29 = sadd.s32 1, %s1603_s15   ;;  %s1605_s19 = sld [smem:[#allocation17_spill]] }
 0x2eb   : > { %p24_p2 = scmp.ge.s32.totalorder %s27_s29, 4   ;;  %s1606_s26 = sld [smem:[#allocation22_spill]] }
 0x2ec   : > { %s1607_s22 = sld [smem:[#allocation20_spill]]  ;;  %s1608_s24 = smov %s1269_s25 }
 0x2ed   : > { %s1610_s27 = smov %s1281_s28 }
 0x2ee   :  { %26 = sbr.rel (!%p24_p2) target bundleno = 14 (0xe), region = 136 }
 0x2f0   : > { %s1609_s25 = smov %s1605_s19 }
 0x2f2   : > { %s1611_s28 = smov %s1607_s22 }
 0x2f3   :  { %724 = vsyncpa [#allocation3], 1 }
 0x2f4   :  { %726 = vsyncpa [#allocation3 + $0x1], 1 }
 0x2f5   :  { %727 = vsyncpa [#allocation6], 1 }
 0x2f6   :  { %729 = vsyncpa [#allocation6 + $0x1], 1 }
 0x2f7   :  { %730 = vsyncpa [#allocation9], 1 }
 0x2f8   :  { %731 = vsyncpa [#allocation4], 1 }
 0x2f9   :  { %733 = vsyncpa [#allocation4 + $0x1], 1 }

</bundles_post_ra>
